<compile_context>
chip_gen: v7x
topology: tpu7x:2x2x1
jax: 0.10.0
libtpu: 0.0.40
codegen_flags: <defaults>
</compile_context>

<pallas_src>
import jax
import jax.numpy as jnp
from jax.experimental import pallas as pl
from jax.experimental.pallas import tpu as pltpu

LANES = 128
MAX_TILE_ROWS = 8192  # 8192 * 128 * 4 B = 4 MiB per tile buffer


def _fused_affine_kernel(x_ref, const_ref, o_ref):
    # x holds interleaved pairs [x0, x1, x0, x1, ...] along the 128 lanes.
    x = x_ref[...]
    c = const_ref[...]  # (4, 128): rows = A, Be, Bo, C
    a = c[0:1, :]
    be = c[1:2, :]
    bo = c[2:3, :]
    cc = c[3:4, :]
    # x_next[i] = x[i+1] (partner for even lanes); x_prev[i] = x[i-1]
    # (partner for odd lanes).  Wrap-around lanes are zeroed by Be/Bo parity.
    x_next = pltpu.roll(x, shift=LANES - 1, axis=1)
    x_prev = pltpu.roll(x, shift=1, axis=1)
    o_ref[...] = x * a + x_next * be + x_prev * bo + cc


def model_forward(input_tensor, weight, bias, x2, x3):
    """Pallas implementation of Model.forward.

    input_tensor: (..., 2) float32
    weight:       (2, 2)   float32  (nn.Linear weight, out x in)
    bias:         (2,)     float32
    x2, x3:       (1, 1, 1, 2) float32
    """
    in_features = weight.shape[1]
    out_features = weight.shape[0]
    assert in_features == 2 and out_features == 2

    lead_shape = input_tensor.shape[:-1]
    m = 1
    for d in lead_shape:
        m *= d
    n = m * in_features  # total interleaved elements (pairs stay adjacent)

    # --- fold bias + x2 + x3 into one per-feature constant (trace time) ---
    w = weight.astype(jnp.float32)
    const = (
        bias.astype(jnp.float32)
        + x2.reshape(-1)[:out_features].astype(jnp.float32)
        + x3.reshape(-1)[:out_features].astype(jnp.float32)
    )

    # --- lane-parity constants packed into one (4, 128) array ---
    lane = jnp.arange(LANES)
    even = (lane % 2) == 0
    consts = jnp.stack(
        [
            jnp.where(even, w[0, 0], w[1, 1]),   # A
            jnp.where(even, w[0, 1], 0.0),        # Be (even-lane partner weight)
            jnp.where(even, 0.0, w[1, 0]),        # Bo (odd-lane partner weight)
            jnp.where(even, const[0], const[1]),  # C  (bias + x2 + x3)
        ]
    ).astype(jnp.float32)

    x_flat = input_tensor.reshape(-1).astype(jnp.float32)

    n_bulk = (n // LANES) * LANES  # 128-aligned bulk goes through the kernel
    rows = n_bulk // LANES
    tail = n - n_bulk              # <128 ragged elements handled in plain jnp

    pieces = []
    if rows > 0:
        # Free bitcast when tail == 0; otherwise a cheap contiguous slice.
        x_lanes = x_flat[:n_bulk].reshape(rows, LANES)

        tile_rows = min(rows, MAX_TILE_ROWS)  # full-array block if rows small
        grid = (pl.cdiv(rows, tile_rows),)    # partial last block handled by Pallas

        cost = pl.CostEstimate(
            flops=6 * n_bulk,
            transcendentals=0,
            bytes_accessed=2 * 4 * rows * LANES,
        )

        out_lanes = pl.pallas_call(
            _fused_affine_kernel,
            out_shape=jax.ShapeDtypeStruct((rows, LANES), jnp.float32),
            grid=grid,
            in_specs=[
                pl.BlockSpec((tile_rows, LANES), lambda i: (i, 0)),  # x
                pl.BlockSpec((4, LANES), lambda i: (0, 0)),          # fused consts
            ],
            out_specs=pl.BlockSpec((tile_rows, LANES), lambda i: (i, 0)),
            compiler_params=pltpu.CompilerParams(
                dimension_semantics=("parallel",),
                vmem_limit_bytes=32 << 20,
            ),
            cost_estimate=cost,
        )(x_lanes, consts)
        pieces.append(out_lanes.reshape(-1))

    if tail > 0:
        x_tail = x_flat[n_bulk:].reshape(-1, in_features)
        pieces.append((x_tail @ w.T + const).reshape(-1))

    out_flat = pieces[0] if len(pieces) == 1 else jnp.concatenate(pieces)
    out = out_flat.reshape(lead_shape + (out_features,))

    # Broadcast against x2/x3 leading dims (no-op for (1,1,1,2) constants).
    out_lead = jnp.broadcast_shapes(lead_shape, x2.shape[:-1])
    return jnp.broadcast_to(out, out_lead + (out_features,))


if __name__ == "__main__":
    key = jax.random.PRNGKey(0)
    k_x, k_w, k_b, k_x2, k_x3, k_xr = jax.random.split(key, 6)

    # nn.Linear(2, 2) parameters, deterministic init (uniform like PyTorch).
    bound = 1.0 / (2.0 ** 0.5)
    weight = jax.random.uniform(
        k_w, (2, 2), minval=-bound, maxval=bound, dtype=jnp.float32
    )
    bias = jax.random.uniform(
        k_b, (2,), minval=-bound, maxval=bound, dtype=jnp.float32
    )
    x2 = jax.random.normal(k_x2, (1, 1, 1, 2), dtype=jnp.float32)
    x3 = jax.random.normal(k_x3, (1, 1, 1, 2), dtype=jnp.float32)

    def reference(x):
        return (x @ weight.T + bias) + (x2 + x3)

    # Case 1: 128-aligned bulk (exercises the Pallas kernel end-to-end).
    x_a = jax.random.normal(k_x, (2, 4, 64, 2), dtype=jnp.float32)
    out_a = jax.block_until_ready(model_forward(x_a, weight, bias, x2, x3))
    ref_a = reference(x_a)
    assert out_a.shape == ref_a.shape, (out_a.shape, ref_a.shape)
    assert jnp.allclose(out_a, ref_a, atol=1e-5, rtol=1e-5)

    # Case 2: ragged size (kernel bulk + <128-element jnp tail path).
    x_b = jax.random.normal(k_xr, (3, 5, 11, 2), dtype=jnp.float32)
    out_b = jax.block_until_ready(model_forward(x_b, weight, bias, x2, x3))
    ref_b = reference(x_b)
    assert out_b.shape == ref_b.shape, (out_b.shape, ref_b.shape)
    assert jnp.allclose(out_b, ref_b, atol=1e-5, rtol=1e-5)

    print("KERNEL_OK")
</pallas_src>

<mosaic_0001>
module attributes {stable_mosaic.version = 11 : i64} {
  func.func @_fused_affine_kernel(%arg0: i32, %arg1: memref<8x128xf32, #tpu.memory_space<vmem>>, %arg2: memref<4x128xf32, #tpu.memory_space<vmem>>, %arg3: memref<8x128xf32, #tpu.memory_space<vmem>>) attributes {dimension_semantics = [#tpu.dimension_semantics<parallel>], iteration_bounds = array<i64: 1>, scalar_prefetch = 0 : i64, scratch_operands = 0 : i64, tpu.core_type = #tpu.core_type<tc>, window_params = [{transform_indices = @transform_0, window_bounds = array<i64: 8, 128>}, {pipeline_mode = #tpu.pipeline_mode<synchronous>, transform_indices = @transform_1, window_bounds = array<i64: 4, 128>}, {transform_indices = @transform_2, window_bounds = array<i64: 8, 128>}]} {
    %c0 = arith.constant 0 : index
    %c0_0 = arith.constant 0 : index
    %0 = vector.load %arg1[%c0, %c0_0] : memref<8x128xf32, #tpu.memory_space<vmem>>, vector<8x128xf32>
    %c0_1 = arith.constant 0 : index
    %c0_2 = arith.constant 0 : index
    %1 = vector.load %arg2[%c0_1, %c0_2] : memref<4x128xf32, #tpu.memory_space<vmem>>, vector<4x128xf32>
    %2 = vector.extract_strided_slice %1 {offsets = [0, 0], sizes = [1, 128], strides = [1, 1]} : vector<4x128xf32> to vector<1x128xf32>
    %3 = vector.extract_strided_slice %1 {offsets = [1, 0], sizes = [1, 128], strides = [1, 1]} : vector<4x128xf32> to vector<1x128xf32>
    %4 = vector.extract_strided_slice %1 {offsets = [2, 0], sizes = [1, 128], strides = [1, 1]} : vector<4x128xf32> to vector<1x128xf32>
    %5 = vector.extract_strided_slice %1 {offsets = [3, 0], sizes = [1, 128], strides = [1, 1]} : vector<4x128xf32> to vector<1x128xf32>
    %c127_i32 = arith.constant 127 : i32
    %6 = tpu.dynamic_rotate %0 by %c127_i32 dim 1 : vector<8x128xf32>, i32 -> vector<8x128xf32>
    %c1_i32 = arith.constant 1 : i32
    %7 = tpu.dynamic_rotate %0 by %c1_i32 dim 1 : vector<8x128xf32>, i32 -> vector<8x128xf32>
    %8 = vector.broadcast %2 : vector<1x128xf32> to vector<8x128xf32>
    %9 = arith.mulf %0, %8 : vector<8x128xf32>
    %10 = vector.broadcast %3 : vector<1x128xf32> to vector<8x128xf32>
    %11 = arith.mulf %6, %10 : vector<8x128xf32>
    %12 = arith.addf %9, %11 : vector<8x128xf32>
    %13 = vector.broadcast %4 : vector<1x128xf32> to vector<8x128xf32>
    %14 = arith.mulf %7, %13 : vector<8x128xf32>
    %15 = arith.addf %12, %14 : vector<8x128xf32>
    %16 = vector.broadcast %5 : vector<1x128xf32> to vector<8x128xf32>
    %17 = arith.addf %15, %16 : vector<8x128xf32>
    %c0_3 = arith.constant 0 : index
    %c0_4 = arith.constant 0 : index
    %18 = vector.load %arg3[%c0_3, %c0_4] : memref<8x128xf32, #tpu.memory_space<vmem>>, vector<8x128xf32>
    tpu.vector_store %arg3[%c0_3, %c0_4], %17 {strides = array<i32>} : memref<8x128xf32, #tpu.memory_space<vmem>>, vector<8x128xf32>,
    return
  }
  func.func @transform_0(%arg0: i32) -> (i32, i32) {
    %c0_i32 = arith.constant 0 : i32
    %c0_i32_0 = arith.constant 0 : i32
    return %arg0, %c0_i32 : i32, i32
  }
  func.func @transform_1(%arg0: i32) -> (i32, i32) {
    %c0_i32 = arith.constant 0 : i32
    %c0_i32_0 = arith.constant 0 : i32
    %c0_i32_1 = arith.constant 0 : i32
    return %c0_i32, %c0_i32_0 : i32, i32
  }
  func.func @transform_2(%arg0: i32) -> (i32, i32) {
    %c0_i32 = arith.constant 0 : i32
    %c0_i32_0 = arith.constant 0 : i32
    return %arg0, %c0_i32 : i32, i32
  }
}

</mosaic_0001>

<bundles_post_ra>
// kernel: tpu_custom_call.1
= control target key start
LH: loop header
LB: loop body
LE: loop exit
PB: predicated region body
PF: predicated region fallthrough
CT: control target
= control target key end

     0   :  { %7 = vsyncpa [#allocation3], 0  ;;  %s214_s0 = inlined_call_operand.hbm [shape: f32[8,128], index: 0, kind: input, shape index: {}]   ;;  %s215_s1 = inlined_call_operand.hbm [shape: f32[4,128], index: 1, kind: input, shape index: {}]   ;;  %s216_s2 = inlined_call_operand.hbm [shape: f32[8,128], index: 2, kind: output, shape index: {}]  }
   0x1   :  { %8 = vsyncpa [#allocation6], 0 }
   0x2   :  { %9 = vsyncpa [#allocation4], 0  ;;  %s158_s9 = smov [#allocation2]   ;;  %s159_s11 = smov [#allocation5]  }
   0x3   :  { %s16_s10 = sshll.u32 %s158_s9, 4  ;;  %s26_s12 = sshll.u32 %s159_s11, 4  ;;  %s17_s10 = int_to_ptr.vmem [resolvable:$true] %s16_s10  ;;  %s27_s12 = int_to_ptr.vmem [resolvable:$true] %s26_s12 }
   0x4   :  { %s86_s15 = scalar_lea.hbm %s214_s0, 128 }
   0x5   :  { %p87_p0 = scmp.ne.s32.totalorder %s214_s0, %s86_s15  ;;  %p90_p1 = scmp.lt.u32.totalorder %s86_s15, %s214_s0 }
   0x7   :  { %p92_p2 = pnand %p90_p1, %p87_p0 }
   0x9   :  { %95 = shalt.err (!%p92_p2)
}
   0xa   :  { %s96_s20 = scalar_lea.vmem %s17_s10, 128  ;;  %p101_p4 = scmp.lt.s32.totalorder %s17_s10, %s17_s10 }
   0xb   :  { %p97_p3 = scmp.ne.s32.totalorder %s17_s10, %s96_s20  ;;  %p102_p5 = scmp.lt.s32.totalorder %s96_s20, %s96_s20 }
   0xd   :  { %p103_p6 = por %p102_p5, %p101_p4 }
   0xf   :  { %p104_p7 = pnand %p103_p6, %p97_p3 }
  0x11   :  { %107 = shalt.err (!%p104_p7)
}
  0x12   :  { %19 = dma.hbm_to_vmem [thread:$0]  %s214_s0, 128, %s17_s10, [#allocation3]  }
  0x13   :  { %s108_s25 = scalar_lea.hbm %s215_s1, 64 }
  0x14   :  { %p109_p8 = scmp.ne.s32.totalorder %s215_s1, %s108_s25  ;;  %p112_p9 = scmp.lt.u32.totalorder %s108_s25, %s215_s1 }
  0x16   :  { %p114_p10 = pnand %p112_p9, %p109_p8 }
  0x18   :  { %117 = shalt.err (!%p114_p10)
}
  0x19   :  { %s118_s30 = scalar_lea.vmem %s27_s12, 64  ;;  %p123_p12 = scmp.lt.s32.totalorder %s27_s12, %s27_s12 }
  0x1a   :  { %p119_p11 = scmp.ne.s32.totalorder %s27_s12, %s118_s30  ;;  %p124_p13 = scmp.lt.s32.totalorder %s118_s30, %s118_s30 }
  0x1c   :  { %p125_p0 = por %p124_p13, %p123_p12 }
  0x1e   :  { %p126_p1 = pnand %p125_p0, %p119_p11 }
  0x20   :  { %129 = shalt.err (!%p126_p1)
}
  0x21   :  { %29 = dma.hbm_to_vmem [thread:$0]  %s215_s1, 64, %s27_s12, [#allocation6]  }
  0x22   :  { %152 = dma.done.wait [#allocation3], 128  }
  0x23   :  { %153 = vsyncadd [#allocation3], 4294967168 }
  0x24   :  { %154 = dma.done.wait [#allocation6], 64  }
  0x25   :  { %155 = vsyncadd [#allocation6], 4294967232  ;;  %v36_v0 = vld [vmem:[#allocation2] sm:$0xff]  ;;  %s160_s4 = smov 127   ;;  %s161_s5 = smov 1   ;;  %v42_v1 = vlaneseq }
  0x26   :  { %38 = vrot.lane.b32.xlu0 %v36_v0, %s160_s4  ;;  %v37_v5 = vld [vmem:[#allocation5] sm:$0xf]  ;;  %s162_s1 = smov [#allocation7]  }
  0x27   :  { %v43_v2 = vshrl.u32 %v42_v1, 7  ;;  %s71_s6 = sshll.u32 %s162_s1, 4  ;;  %s72_s6 = int_to_ptr.vmem [resolvable:$true] %s71_s6 }
  0x28   :  { %s130_s7 = scalar_lea.vmem %s72_s6, 128  ;;  %p135_p3 = scmp.lt.s32.totalorder %s72_s6, %s72_s6 }
  0x29   :  { %v44_v3 = vsub.s32 0, %v43_v2  ;;  %v49_v4 = vsub.s32 1, %v43_v2  ;;  %v55_v8 = vsub.s32 2, %v43_v2  ;;  %v61_v13 = vsub.s32 3, %v43_v2  ;;  %p131_p2 = scmp.ne.s32.totalorder %s72_s6, %s130_s7  ;;  %p136_p4 = scmp.lt.s32.totalorder %s130_s7, %s130_s7 }
  0x2a   :  { %40 = vrot.lane.b32.xlu0 %v36_v0, %s161_s5 }
  0x2b   :  { %v45_v6 = vrot.slane %v37_v5, %v44_v3  ;;  %v50_v7 = vrot.slane %v37_v5, %v49_v4  ;;  %v56_v12 = vrot.slane %v37_v5, %v55_v8  ;;  %v62_v17 = vrot.slane %v37_v5, %v61_v13  ;;  %p137_p5 = por %p136_p4, %p135_p3 }
  0x2d   :  { %v46_v10 = vmul.f32 %v45_v6, %v36_v0  ;;  %p138_p6 = pnand %p137_p5, %p131_p2 }
  0x98   :  { %v39_v9 = vpop.permute.xlu0 %38 }
  0x99   :  { %v51_v11 = vmul.f32 %v50_v7, %v39_v9 }
  0x9b   :  { %v52_v15 = vadd.f32 %v51_v11, %v46_v10 }
  0x9c   :  { %v41_v14 = vpop.permute.xlu0 %40 }
  0x9d   :  { %v57_v16 = vmul.f32 %v56_v12, %v41_v14 }
  0x9f   :  { %v58_v18 = vadd.f32 %v57_v16, %v52_v15 }
  0xa1   :  { %v63_v19 = vadd.f32 %v62_v17, %v58_v18 }
  0xa3   :  { %64 = vst [vmem:[#allocation7] sm:$0xff] %v63_v19 }
  0xa4   :  { %141 = shalt.err (!%p138_p6)
}
  0xa5   :  { %s142_s10 = scalar_lea.hbm %s216_s2, 128 }
  0xa6   :  { %p143_p7 = scmp.ne.s32.totalorder %s216_s2, %s142_s10  ;;  %p146_p8 = scmp.lt.u32.totalorder %s142_s10, %s216_s2 }
  0xa8   :  { %p148_p9 = pnand %p146_p8, %p143_p7 }
  0xaa   :  { %151 = shalt.err (!%p148_p9)
}
  0xab   :  { %74 = dma.vmem_to_hbm [thread:$0]  %s72_s6, 128, %s216_s2, [#allocation4]  }
  0xac   :  { %156 = dma.done.wait [#allocation4], 128  }
  0xad   :  { %157 = vsyncadd [#allocation4], 4294967168 }
  0xae   :  { %78 = vsyncpa [#allocation3], 1 }
  0xaf   :  { %79 = vsyncpa [#allocation6], 1 }
  0xb0   :  { %80 = vsyncpa [#allocation4], 1 }

</bundles_post_ra>
